<compile_context>
chip_gen: v6e
topology: v6e:2x2x1
jax: 0.10.0
libtpu: 0.0.40
codegen_flags: <defaults>
</compile_context>

<pallas_src>
import functools

import jax
import jax.numpy as jnp
from jax.experimental import pallas as pl
from jax.experimental.pallas import tpu as pltpu

LANE = 128
SUBLANE = 8


def _round_up(n, m):
    return ((n + m - 1) // m) * m


def _cdiv(a, b):
    return -(-a // b)


def dqn_mlp_kernel(x_ref, w1_ref, b1_ref, gamma_ref, beta_ref, w2_ref, b2_ref,
                   o_ref, *, hidden_size, negative_slope=0.01, eps=1e-5):
    # Linear 1: (TM, S) @ (S, Hp) + (1, Hp).  Padded H lanes of h are exactly 0
    # (zero-padded w1 columns and b1).
    x = x_ref[...]
    h = jnp.dot(x, w1_ref[...], preferred_element_type=jnp.float32) + b1_ref[...]

    hp = h.shape[-1]
    lane_idx = jax.lax.broadcasted_iota(jnp.int32, (1, hp), 1)
    lane_mask = lane_idx < hidden_size

    # Exact two-pass LayerNorm over the logical hidden_size lanes.
    inv_h = jnp.float32(1.0 / hidden_size)
    mean = jnp.sum(h, axis=-1, keepdims=True) * inv_h          # pads are 0 -> exact
    c = jnp.where(lane_mask, h - mean, 0.0)                    # mask pads out of variance
    var = jnp.sum(c * c, axis=-1, keepdims=True) * inv_h
    hn = c * jax.lax.rsqrt(var + eps)                          # rsqrt -> EUP slot
    # gamma/beta are zero-padded -> padded lanes stay exactly 0.
    hn = hn * gamma_ref[...] + beta_ref[...]

    # LeakyReLU (negative_slope = 0.01, PyTorch default) — single VPU vselect.
    a = jnp.where(hn >= 0, hn, negative_slope * hn)

    # Linear 2: (TM, Hp) @ (Hp, A) + (1, A).  Padded rows of w2 are zero.
    o_ref[...] = jnp.dot(a, w2_ref[...], preferred_element_type=jnp.float32) + b2_ref[...]


def prepare_params(w1, b1, gamma, beta, w2, b2):
    """Pad parameters ONCE (lane-align the hidden dim; output dim left unpadded).

    w1: (S, H); b1/gamma/beta: (1, H); w2: (H, A); b2: (1, A).
    Returns (w1p, b1p, gammap, betap, w2p, b2p) with H -> Hp = round_up(H, 128).
    """
    H = w1.shape[1]
    Hp = _round_up(H, LANE)
    pad_h = Hp - H
    w1p = jnp.pad(w1, ((0, 0), (0, pad_h)))
    b1p = jnp.pad(b1, ((0, 0), (0, pad_h)))
    gp = jnp.pad(gamma, ((0, 0), (0, pad_h)))
    bp = jnp.pad(beta, ((0, 0), (0, pad_h)))
    w2p = jnp.pad(w2, ((0, pad_h), (0, 0)))
    b2p = b2
    return w1p, b1p, gp, bp, w2p, b2p


def dqn_forward(x, w1p, b1p, gammap, betap, w2p, b2p, *, hidden_size, block_m=2048):
    """x: (B, S); padded params from prepare_params(). Returns (B, A) float32."""
    B, S = x.shape
    Hp = w1p.shape[1]
    A = w2p.shape[1]

    # Balanced batch tiling: 1-4 grid steps, even step count when B is large enough
    # so both v7x TensorCores are used; tiles are multiples of 8 sublanes.
    n = _cdiv(B, block_m)
    if B >= 2 * SUBLANE:
        n += n % 2                     # round grid length up to even (v7x megacore)
    tm = _round_up(_cdiv(B, n), SUBLANE)
    Bp = n * tm

    xp = x if Bp == B else jnp.pad(x, ((0, Bp - B), (0, 0)))

    kernel = functools.partial(dqn_mlp_kernel, hidden_size=hidden_size)

    flops = 2 * Bp * (S * Hp + Hp * A)
    bytes_accessed = 4 * (Bp * S + S * Hp + 3 * Hp + Hp * A + A + Bp * A)
    cost = pl.CostEstimate(flops=flops, transcendentals=Bp,
                           bytes_accessed=bytes_accessed)

    out = pl.pallas_call(
        kernel,
        out_shape=jax.ShapeDtypeStruct((Bp, A), jnp.float32),
        grid=(n,),
        in_specs=[
            pl.BlockSpec((tm, S), lambda i: (i, 0)),      # x: tiled over batch (pipelined DMA)
            pl.BlockSpec((S, Hp), lambda i: (0, 0)),      # weights resident in VMEM
            pl.BlockSpec((1, Hp), lambda i: (0, 0)),
            pl.BlockSpec((1, Hp), lambda i: (0, 0)),
            pl.BlockSpec((1, Hp), lambda i: (0, 0)),
            pl.BlockSpec((Hp, A), lambda i: (0, 0)),
            pl.BlockSpec((1, A), lambda i: (0, 0)),
        ],
        out_specs=pl.BlockSpec((tm, A), lambda i: (i, 0)),  # unpadded A (full last dim)
        compiler_params=pltpu.CompilerParams(
            dimension_semantics=("parallel",)),             # megacore sharding on v7x
        cost_estimate=cost,
    )(xp, w1p, b1p, gammap, betap, w2p, b2p)

    return out if Bp == B else out[:B]


def init_params(key, state_size, hidden_size, action_size):
    """PyTorch-style init: Linear U[-1/sqrt(fan_in), 1/sqrt(fan_in)], LayerNorm gamma=1, beta=0.
    Weights stored transposed to (in, out) so the kernel does x @ W."""
    k1, k2, k3, k4 = jax.random.split(key, 4)
    bound1 = 1.0 / jnp.sqrt(state_size)
    bound2 = 1.0 / jnp.sqrt(hidden_size)
    w1 = jax.random.uniform(k1, (state_size, hidden_size), jnp.float32, -bound1, bound1)
    b1 = jax.random.uniform(k2, (1, hidden_size), jnp.float32, -bound1, bound1)
    gamma = jnp.ones((1, hidden_size), jnp.float32)
    beta = jnp.zeros((1, hidden_size), jnp.float32)
    w2 = jax.random.uniform(k3, (hidden_size, action_size), jnp.float32, -bound2, bound2)
    b2 = jax.random.uniform(k4, (1, action_size), jnp.float32, -bound2, bound2)
    return w1, b1, gamma, beta, w2, b2


def reference_forward(x, w1, b1, gamma, beta, w2, b2):
    h = x @ w1 + b1
    mean = jnp.mean(h, axis=-1, keepdims=True)
    var = jnp.mean((h - mean) ** 2, axis=-1, keepdims=True)
    hn = (h - mean) / jnp.sqrt(var + 1e-5) * gamma + beta
    a = jnp.where(hn >= 0, hn, 0.01 * hn)
    return a @ w2 + b2


if __name__ == "__main__":
    # LunarLander-v2: state_size=8, action_size=4; hidden_size=32.
    state_size, hidden_size, action_size = 8, 32, 4

    key = jax.random.PRNGKey(0)
    kx, kp, kx2 = jax.random.split(key, 3)
    raw_params = init_params(kp, state_size, hidden_size, action_size)
    padded_params = prepare_params(*raw_params)     # padding hoisted out of the forward

    fwd = jax.jit(functools.partial(dqn_forward, hidden_size=hidden_size))

    # Case 1: small batch (single grid step).
    x_small = jax.random.normal(kx, (8, state_size), dtype=jnp.float32)
    out_small = jax.block_until_ready(fwd(x_small, *padded_params))
    ref_small = reference_forward(x_small, *raw_params)
    assert out_small.shape == (8, action_size)
    assert jnp.allclose(out_small, ref_small, atol=1e-4, rtol=1e-4), "mismatch (small batch)"

    # Case 2: larger, non-multiple-of-tile batch (exercises the even 2-step grid + row padding).
    x_big = jax.random.normal(kx2, (200, state_size), dtype=jnp.float32)
    out_big = jax.block_until_ready(fwd(x_big, *padded_params))
    ref_big = reference_forward(x_big, *raw_params)
    assert out_big.shape == (200, action_size)
    assert jnp.allclose(out_big, ref_big, atol=1e-4, rtol=1e-4), "mismatch (large batch)"

    print("KERNEL_OK")
</pallas_src>

<mosaic_0001>
module attributes {stable_mosaic.version = 11 : i64} {
  func.func @dqn_mlp_kernel(%arg0: i32, %arg1: memref<8x8xf32, #tpu.memory_space<vmem>>, %arg2: memref<8x128xf32, #tpu.memory_space<vmem>>, %arg3: memref<1x128xf32, #tpu.memory_space<vmem>>, %arg4: memref<1x128xf32, #tpu.memory_space<vmem>>, %arg5: memref<1x128xf32, #tpu.memory_space<vmem>>, %arg6: memref<128x4xf32, #tpu.memory_space<vmem>>, %arg7: memref<1x4xf32, #tpu.memory_space<vmem>>, %arg8: memref<8x4xf32, #tpu.memory_space<vmem>>) attributes {dimension_semantics = [#tpu.dimension_semantics<parallel>], iteration_bounds = array<i64: 1>, scalar_prefetch = 0 : i64, scratch_operands = 0 : i64, tpu.core_type = #tpu.core_type<tc>, window_params = [{transform_indices = @transform_0, window_bounds = array<i64: 8, 8>}, {pipeline_mode = #tpu.pipeline_mode<synchronous>, transform_indices = @transform_1, window_bounds = array<i64: 8, 128>}, {pipeline_mode = #tpu.pipeline_mode<synchronous>, transform_indices = @transform_2, window_bounds = array<i64: 1, 128>}, {pipeline_mode = #tpu.pipeline_mode<synchronous>, transform_indices = @transform_3, window_bounds = array<i64: 1, 128>}, {pipeline_mode = #tpu.pipeline_mode<synchronous>, transform_indices = @transform_4, window_bounds = array<i64: 1, 128>}, {pipeline_mode = #tpu.pipeline_mode<synchronous>, transform_indices = @transform_5, window_bounds = array<i64: 128, 4>}, {pipeline_mode = #tpu.pipeline_mode<synchronous>, transform_indices = @transform_6, window_bounds = array<i64: 1, 4>}, {transform_indices = @transform_7, window_bounds = array<i64: 8, 4>}]} {
    %c0 = arith.constant 0 : index
    %c0_0 = arith.constant 0 : index
    %0 = vector.load %arg1[%c0, %c0_0] : memref<8x8xf32, #tpu.memory_space<vmem>>, vector<8x8xf32>
    %c0_1 = arith.constant 0 : index
    %c0_2 = arith.constant 0 : index
    %1 = vector.load %arg2[%c0_1, %c0_2] : memref<8x128xf32, #tpu.memory_space<vmem>>, vector<8x128xf32>
    %cst = arith.constant dense<0.000000e+00> : vector<8x128xf32>
    %2 = tpu.matmul %0, %1, %cst {dimension_numbers = #tpu.dot_dimension_numbers<[1], [0], [0], [1], [0, 0, 1, 1], [], []>} : vector<8x8xf32>, vector<8x128xf32>, vector<8x128xf32> -> vector<8x128xf32>
    %c0_3 = arith.constant 0 : index
    %c0_4 = arith.constant 0 : index
    %3 = vector.load %arg3[%c0_3, %c0_4] : memref<1x128xf32, #tpu.memory_space<vmem>>, vector<1x128xf32>
    %4 = vector.broadcast %3 : vector<1x128xf32> to vector<8x128xf32>
    %5 = arith.addf %2, %4 : vector<8x128xf32>
    %6 = tpu.iota {dimensions = array<i32: 1>} : vector<1x128xi32>
    %c32_i32 = arith.constant 32 : i32
    %7 = vector.broadcast %c32_i32 : i32 to vector<1x128xi32>
    %8 = arith.cmpi slt, %6, %7 : vector<1x128xi32>
    %cst_5 = arith.constant dense<0.000000e+00> : vector<8xf32>
    %9 = vector.multi_reduction <add>, %5, %cst_5 [1] : vector<8x128xf32> to vector<8xf32>
    %10 = vector.shape_cast %9 : vector<8xf32> to vector<8x1xf32>
    %cst_6 = arith.constant 3.125000e-02 : f32
    %11 = vector.broadcast %cst_6 : f32 to vector<8x1xf32>
    %12 = arith.mulf %10, %11 : vector<8x1xf32>
    %13 = vector.broadcast %12 : vector<8x1xf32> to vector<8x128xf32>
    %14 = arith.subf %5, %13 : vector<8x128xf32>
    %cst_7 = arith.constant 0.000000e+00 : f32
    %15 = vector.shape_cast %8 : vector<1x128xi1> to vector<1x128xi1>
    %16 = vector.broadcast %15 : vector<1x128xi1> to vector<8x128xi1>
    %17 = vector.broadcast %cst_7 : f32 to vector<8x128xf32>
    %18 = arith.select %16, %14, %17 : vector<8x128xi1>, vector<8x128xf32>
    %19 = arith.mulf %18, %18 : vector<8x128xf32>
    %cst_8 = arith.constant dense<0.000000e+00> : vector<8xf32>
    %20 = vector.multi_reduction <add>, %19, %cst_8 [1] : vector<8x128xf32> to vector<8xf32>
    %21 = vector.shape_cast %20 : vector<8xf32> to vector<8x1xf32>
    %cst_9 = arith.constant 3.125000e-02 : f32
    %22 = vector.broadcast %cst_9 : f32 to vector<8x1xf32>
    %23 = arith.mulf %21, %22 : vector<8x1xf32>
    %cst_10 = arith.constant 9.99999974E-6 : f32
    %24 = vector.broadcast %cst_10 : f32 to vector<8x1xf32>
    %25 = arith.addf %23, %24 : vector<8x1xf32>
    %26 = math.rsqrt %25 : vector<8x1xf32>
    %27 = vector.broadcast %26 : vector<8x1xf32> to vector<8x128xf32>
    %28 = arith.mulf %18, %27 : vector<8x128xf32>
    %c0_11 = arith.constant 0 : index
    %c0_12 = arith.constant 0 : index
    %29 = vector.load %arg4[%c0_11, %c0_12] : memref<1x128xf32, #tpu.memory_space<vmem>>, vector<1x128xf32>
    %30 = vector.broadcast %29 : vector<1x128xf32> to vector<8x128xf32>
    %31 = arith.mulf %28, %30 : vector<8x128xf32>
    %c0_13 = arith.constant 0 : index
    %c0_14 = arith.constant 0 : index
    %32 = vector.load %arg5[%c0_13, %c0_14] : memref<1x128xf32, #tpu.memory_space<vmem>>, vector<1x128xf32>
    %33 = vector.broadcast %32 : vector<1x128xf32> to vector<8x128xf32>
    %34 = arith.addf %31, %33 : vector<8x128xf32>
    %cst_15 = arith.constant 0.000000e+00 : f32
    %35 = vector.broadcast %cst_15 : f32 to vector<8x128xf32>
    %36 = arith.cmpf oge, %34, %35 : vector<8x128xf32>
    %cst_16 = arith.constant 0.00999999977 : f32
    %37 = vector.broadcast %cst_16 : f32 to vector<8x128xf32>
    %38 = arith.mulf %37, %34 : vector<8x128xf32>
    %39 = arith.select %36, %34, %38 : vector<8x128xi1>, vector<8x128xf32>
    %c0_17 = arith.constant 0 : index
    %c0_18 = arith.constant 0 : index
    %40 = vector.load %arg6[%c0_17, %c0_18] : memref<128x4xf32, #tpu.memory_space<vmem>>, vector<128x4xf32>
    %cst_19 = arith.constant dense<0.000000e+00> : vector<8x4xf32>
    %41 = tpu.matmul %39, %40, %cst_19 {dimension_numbers = #tpu.dot_dimension_numbers<[1], [0], [0], [1], [0, 0, 1, 1], [], []>} : vector<8x128xf32>, vector<128x4xf32>, vector<8x4xf32> -> vector<8x4xf32>
    %c0_20 = arith.constant 0 : index
    %c0_21 = arith.constant 0 : index
    %42 = vector.load %arg7[%c0_20, %c0_21] : memref<1x4xf32, #tpu.memory_space<vmem>>, vector<1x4xf32>
    %43 = vector.broadcast %42 : vector<1x4xf32> to vector<8x4xf32>
    %44 = arith.addf %41, %43 : vector<8x4xf32>
    %c0_22 = arith.constant 0 : index
    %c0_23 = arith.constant 0 : index
    %45 = vector.load %arg8[%c0_22, %c0_23] : memref<8x4xf32, #tpu.memory_space<vmem>>, vector<8x4xf32>
    tpu.vector_store %arg8[%c0_22, %c0_23], %44 {strides = array<i32>} : memref<8x4xf32, #tpu.memory_space<vmem>>, vector<8x4xf32>,
    return
  }
  func.func @transform_0(%arg0: i32) -> (i32, i32) {
    %c0_i32 = arith.constant 0 : i32
    %c0_i32_0 = arith.constant 0 : i32
    return %arg0, %c0_i32 : i32, i32
  }
  func.func @transform_1(%arg0: i32) -> (i32, i32) {
    %c0_i32 = arith.constant 0 : i32
    %c0_i32_0 = arith.constant 0 : i32
    %c0_i32_1 = arith.constant 0 : i32
    return %c0_i32, %c0_i32_0 : i32, i32
  }
  func.func @transform_2(%arg0: i32) -> (i32, i32) {
    %c0_i32 = arith.constant 0 : i32
    %c0_i32_0 = arith.constant 0 : i32
    %c0_i32_1 = arith.constant 0 : i32
    return %c0_i32, %c0_i32_0 : i32, i32
  }
  func.func @transform_3(%arg0: i32) -> (i32, i32) {
    %c0_i32 = arith.constant 0 : i32
    %c0_i32_0 = arith.constant 0 : i32
    %c0_i32_1 = arith.constant 0 : i32
    return %c0_i32, %c0_i32_0 : i32, i32
  }
  func.func @transform_4(%arg0: i32) -> (i32, i32) {
    %c0_i32 = arith.constant 0 : i32
    %c0_i32_0 = arith.constant 0 : i32
    %c0_i32_1 = arith.constant 0 : i32
    return %c0_i32, %c0_i32_0 : i32, i32
  }
  func.func @transform_5(%arg0: i32) -> (i32, i32) {
    %c0_i32 = arith.constant 0 : i32
    %c0_i32_0 = arith.constant 0 : i32
    %c0_i32_1 = arith.constant 0 : i32
    return %c0_i32, %c0_i32_0 : i32, i32
  }
  func.func @transform_6(%arg0: i32) -> (i32, i32) {
    %c0_i32 = arith.constant 0 : i32
    %c0_i32_0 = arith.constant 0 : i32
    %c0_i32_1 = arith.constant 0 : i32
    return %c0_i32, %c0_i32_0 : i32, i32
  }
  func.func @transform_7(%arg0: i32) -> (i32, i32) {
    %c0_i32 = arith.constant 0 : i32
    %c0_i32_0 = arith.constant 0 : i32
    return %arg0, %c0_i32 : i32, i32
  }
}

</mosaic_0001>

<bundles_post_ra>
// kernel: dqn_forward.1
= control target key start
LH: loop header
LB: loop body
LE: loop exit
PB: predicated region body
PF: predicated region fallthrough
CT: control target
= control target key end

     0   :  { %vm35_vm0 = vcmask 64512   ;;  %v312_v0 = vmov 0.0   ;;  %vm313_vm1 = vmmov 0   ;;  %v109_v9 = vlaneseq  ;;  %s442_s1 = inlined_call_operand.vmem [shape: f32[8,128], index: 1, kind: input, shape index: {}]   ;;  %s443_s0 = inlined_call_operand.vmem [shape: f32[8,8], index: 0, kind: input, shape index: {}]   ;;  %s444_s2 = inlined_call_operand.vmem [shape: f32[1,128], index: 2, kind: input, shape index: {}]   ;;  %s445_s5 = inlined_call_operand.vmem [shape: f32[128,4], index: 5, kind: input, shape index: {}]   ;;  %s446_s3 = inlined_call_operand.vmem [shape: f32[1,128], index: 3, kind: input, shape index: {}]   ;;  %s447_s4 = inlined_call_operand.vmem [shape: f32[1,128], index: 4, kind: input, shape index: {}]   ;;  %s448_s6 = inlined_call_operand.vmem [shape: f32[1,4], index: 6, kind: input, shape index: {}]   ;;  %s449_s7 = inlined_call_operand.vmem [shape: f32[8,4], index: 7, kind: output, shape index: {}]  }
   0x1   :  { %268 = vmatprep.subr.mxu0 %v312_v0  ;;  %v27_v1 = vld [vmem:[%s442_s1] sm:$0xff]  ;;  %270 = vmatprep.mubr.msk.f32.mxu0 %vm313_vm1, %v312_v0  ;;  %v160_v7 = vld [vmem:[%s445_s5 + $0x78] sm:$0xff]  ;;  %v159_v8 = vld [vmem:[%s445_s5 + $0x70] sm:$0xff]  ;;  %vm238_vm4 = vcmask 31744  }
   0x2   :  { %v26_v2 = vld [vmem:[%s443_s0] sm:$0xff]  ;;  %269 = vmatpush3.msra.mxu0 %v27_v1  ;;  %273 = vmatprep.subr.mxu1 %v312_v0  ;;  %v110_v10 = vand.u32 127, %v109_v9  ;;  %v158_v16 = vld [vmem:[%s445_s5 + $0x68] sm:$0xff]  ;;  %v156_v18 = vld [vmem:[%s445_s5 + $0x58] sm:$0xff] }
   0x3   :  { %271 = vmatmul.mubr.msk.f32.vlgmr.msra.gmra.mxu0 %vm35_vm0, %v26_v2  ;;  %305 = vmatprep.mubr.msk.f32.mxu1 %vm313_vm1, %v312_v0  ;;  %v244_v3 = vld [vmem:[%s444_s2] ss:$0 sm:$0xff]  ;;  %v155_v19 = vld [vmem:[%s445_s5 + $0x50] sm:$0xff]  ;;  %v154_v20 = vld [vmem:[%s445_s5 + $0x48] sm:$0xff] }
   0x4   :  { %274 = vmatpush3.msra.mxu1 %v160_v7  ;;  %vm111_vm2 = vcmp.lt.s32.totalorder %v110_v10, 32  ;;  %v157_v17 = vld [vmem:[%s445_s5 + $0x60] sm:$0xff]  ;;  %v152_v22 = vld [vmem:[%s445_s5 + $0x38] sm:$0xff]  ;;  %v151_v23 = vld [vmem:[%s445_s5 + $0x30] sm:$0xff] }
   0x5   :  { %275 = vmatprep.subr.mxu1 %v312_v0  ;;  %v153_v21 = vld [vmem:[%s445_s5 + $0x40] sm:$0xff]  ;;  %v150_v24 = vld [vmem:[%s445_s5 + $0x28] sm:$0xff]  ;;  %v148_v26 = vld [vmem:[%s445_s5 + $0x18] sm:$0xff] }
   0x6   :  { %276 = vmatpush3.msra.mxu1 %v159_v8  ;;  %v149_v25 = vld [vmem:[%s445_s5 + $0x20] sm:$0xff]  ;;  %v147_v27 = vld [vmem:[%s445_s5 + $0x10] sm:$0xff]  ;;  %v146_v28 = vld [vmem:[%s445_s5 + $0x8] sm:$0xff] }
   0x7   :  { %277 = vmatprep.subr.mxu1 %v312_v0  ;;  %v145_v29 = vld [vmem:[%s445_s5] sm:$0xff] }
   0x8   :  { %278 = vmatpush3.msra.mxu1 %v158_v16  ;;  %v246_v34 = vld [vmem:[%s446_s3] ss:$0 sm:$0xff] }
   0x9   :  { %279 = vmatprep.subr.mxu1 %v312_v0  ;;  %v247_v36 = vld [vmem:[%s447_s4] ss:$0 sm:$0xff] }
   0xa   :  { %280 = vmatpush3.msra.mxu1 %v157_v17  ;;  %v248_v41 = vld [vmem:[%s448_s6] ss:$0 sm:$0xff] }
   0xb   :  { %281 = vmatprep.subr.mxu1 %v312_v0 }
   0xc   :  { %282 = vmatpush3.msra.mxu1 %v156_v18 }
   0xd   :  { %283 = vmatprep.subr.mxu1 %v312_v0 }
   0xe   :  { %284 = vmatpush3.msra.mxu1 %v155_v19 }
   0xf   :  { %285 = vmatprep.subr.mxu1 %v312_v0 }
  0x10   :  { %286 = vmatpush3.msra.mxu1 %v154_v20 }
  0x11   :  { %287 = vmatprep.subr.mxu1 %v312_v0 }
  0x12   :  { %288 = vmatpush3.msra.mxu1 %v153_v21 }
  0x13   :  { %289 = vmatprep.subr.mxu1 %v312_v0 }
  0x14   :  { %290 = vmatpush3.msra.mxu1 %v152_v22 }
  0x15   :  { %291 = vmatprep.subr.mxu1 %v312_v0 }
  0x16   :  { %292 = vmatpush3.msra.mxu1 %v151_v23 }
  0x17   :  { %293 = vmatprep.subr.mxu1 %v312_v0 }
  0x18   :  { %294 = vmatpush3.msra.mxu1 %v150_v24 }
  0x19   :  { %295 = vmatprep.subr.mxu1 %v312_v0 }
  0x1a   :  { %296 = vmatpush3.msra.mxu1 %v149_v25 }
  0x1b   :  { %297 = vmatprep.subr.mxu1 %v312_v0 }
  0x1c   :  { %298 = vmatpush3.msra.mxu1 %v148_v26 }
  0x1d   :  { %299 = vmatprep.subr.mxu1 %v312_v0 }
  0x1e   :  { %300 = vmatpush3.msra.mxu1 %v147_v27 }
  0x1f   :  { %301 = vmatprep.subr.mxu1 %v312_v0 }
  0x20   :  { %302 = vmatpush3.msra.mxu1 %v146_v28 }
  0x21   :  { %303 = vmatprep.subr.mxu1 %v312_v0 }
  0x22   :  { %304 = vmatpush3.msra.mxu1 %v145_v29 }
  0xc3   :  { %v105_v4 = vpop.f32.mrf.mxu0 }
  0xc4   :  { %v106_v5 = vadd.f32 %v244_v3, %v105_v4 }
  0xc5   :  { %v272_v6 = vpop.f32.mrf.mxu0 }
  0xc6   :  { %112 = vadd.xlane.f32.xlu0 %v106_v5 }
 0x14f   :  { %v113_v11 = vpop.xlane.xlu0 %112 }
 0x150   :  { %v114_v12 = vmul.f32 0.03125, %v113_v11 }
 0x152   :  { %v115_v13 = vsub.f32 %v106_v5, %v114_v12 }
 0x154   :  { %v118_v14 = vsel %vm111_vm2, %v115_v13, 0.0 }
 0x155   :  { %v119_v15 = vmul.f32 %v118_v14, %v118_v14 }
 0x157   :  { %120 = vadd.xlane.f32.xlu0 %v119_v15 }
 0x1e0   :  { %v121_v30 = vpop.xlane.xlu0 %120 }
 0x1e1   :  { %v122_v31 = vmul.f32 0.03125, %v121_v30 }
 0x1e3   :  { %v123_v32 = vadd.f32 1e-05, %v122_v31 }
 0x1e5   :  { %310 = vrsqrt.f32 %v123_v32 }
 0x1f2   :  { %v311_v33 = vpop.eup %310 }
 0x1f3   :  { %v125_v35 = vmul.f32 %v311_v33, %v118_v14 }
 0x1f5   :  { %v133_v37 = vmul.f32 %v246_v34, %v125_v35 }
 0x1f7   :  { %v141_v38 = vadd.f32 %v247_v36, %v133_v37 }
 0x1f9   :  { %vm142_vm3 = vcmp.ge.f32.partialorder %v141_v38, 0.0  ;;  %v143_v39 = vmul.f32 0.01, %v141_v38 }
 0x1fb   :  { %v144_v40 = vsel %vm142_vm3, %v141_v38, %v143_v39 }
 0x1fc   :  { %306 = vmatmul.mubr.f32.vlgmr.msra.gmra.mxu1 %v144_v40 }
 0x2bc   :  { %v234_v42 = vpop.f32.mrf.mxu1 }
 0x2bd   :  { %v235_v43 = vadd.f32 %v248_v41, %v234_v42 }
 0x2be   :  { %v307_v44 = vpop.f32.mrf.mxu1 }
 0x2bf   :  { %239 = vst.msk [vmem:[%s449_s7] sm:$0xff] %vm238_vm4, %v235_v43 }

</bundles_post_ra>
